<compile_context>
chip_gen: v6e
topology: v6e:2x2x1
jax: 0.10.0
libtpu: 0.0.40
codegen_flags: <defaults>
</compile_context>

<pallas_src>
import functools

import jax
import jax.numpy as jnp
from jax.experimental import pallas as pl
from jax.experimental.pallas import tpu as pltpu


def _round_up(n, m=128):
    return ((n + m - 1) // m) * m


def _mlp_g_kernel(n_hidden, eps, *refs):
    """refs = [x_ref, w_0..w_{n_hidden}, gb_ref, b_out_ref, o_ref]

    x_ref            : (B, Din_p)  f32
    w_i (hidden)     : (Din_p or Dh_p, Dh_p)  bf16
    w_{n_hidden}     : (Dh_p, Dout_p)         bf16  (output layer)
    gb_ref           : (n_hidden, 2, Dh_p)    f32   [i,0]=gamma_i, [i,1]=beta_i
    b_out_ref        : (1, Dout_p)            f32
    o_ref            : (B, Dout_p)            f32
    """
    x_ref = refs[0]
    w_refs = refs[1:n_hidden + 2]
    gb_ref = refs[n_hidden + 2]
    b_out_ref = refs[n_hidden + 3]
    o_ref = refs[n_hidden + 4]

    h = x_ref[...]  # f32
    for i in range(n_hidden):
        # Linear (MXU, bf16 inputs, f32 accumulation). Hidden bias omitted: BN cancels it.
        h = jnp.dot(h.astype(jnp.bfloat16), w_refs[i][...],
                    preferred_element_type=jnp.float32)
        # BatchNorm1d (training mode: batch mean + biased batch variance), fused with ReLU.
        gb_i = gb_ref[i]                       # (2, Dh_p) f32
        mean = jnp.mean(h, axis=0, keepdims=True)
        hc = h - mean
        var = jnp.mean(hc * hc, axis=0, keepdims=True)
        scale = gb_i[0:1, :] * jax.lax.rsqrt(var + eps)   # gamma / sqrt(var+eps)  (EUP rsqrt)
        h = jnp.maximum(hc * scale + gb_i[1:2, :], 0.0)   # BN affine + ReLU

    # Final Linear (keeps its bias).
    out = jnp.dot(h.astype(jnp.bfloat16), w_refs[n_hidden][...],
                  preferred_element_type=jnp.float32)
    o_ref[...] = (out + b_out_ref[...]).astype(o_ref.dtype)


def init_mlp_g_params(key, ninput, noutput, layers_str, init_std=0.02):
    """Matches MLP_G.init_weights(): linear weights & BN gammas ~ N(0, 0.02),
    all biases / betas = 0.  Hidden linear biases are not materialized (BN cancels them)."""
    layer_sizes = [ninput] + [int(x) for x in layers_str.split('-')]
    weights, gammas, betas = [], [], []
    for i in range(len(layer_sizes) - 1):
        d_in, d_out = layer_sizes[i], layer_sizes[i + 1]
        key, k_w, k_g = jax.random.split(key, 3)
        weights.append(jax.random.normal(k_w, (d_in, d_out), jnp.float32) * init_std)
        gammas.append(jax.random.normal(k_g, (d_out,), jnp.float32) * init_std)
        betas.append(jnp.zeros((d_out,), jnp.float32))
    key, k_w = jax.random.split(key)
    weights.append(jax.random.normal(k_w, (layer_sizes[-1], noutput), jnp.float32) * init_std)
    b_out = jnp.zeros((noutput,), jnp.float32)
    return weights, gammas, betas, b_out


def mlp_g_forward(x, weights, gammas, betas, b_out, eps=1e-5):
    n_hidden = len(gammas)
    batch, ninput = x.shape
    noutput = weights[-1].shape[1]

    # Lane-dense padded sizes (multiples of 128).
    din_p = _round_up(ninput)
    dh_p = _round_up(max(w.shape[1] for w in weights[:-1]))
    dout_p = _round_up(noutput)

    # Padded input (extra columns are zero -> contribute nothing through zero-padded weights).
    x_p = jnp.zeros((batch, din_p), jnp.float32).at[:, :ninput].set(x.astype(jnp.float32))

    # Zero-padded bf16 weights.
    w_ps = []
    in_dim_p = din_p
    for i, w in enumerate(weights):
        out_dim_p = dh_p if i < n_hidden else dout_p
        wp = jnp.zeros((in_dim_p, out_dim_p), jnp.bfloat16)
        wp = wp.at[:w.shape[0], :w.shape[1]].set(w.astype(jnp.bfloat16))
        w_ps.append(wp)
        in_dim_p = out_dim_p

    # Packed gamma/beta for all hidden layers: (L, 2, Dh_p), zero-padded.
    gb = jnp.zeros((n_hidden, 2, dh_p), jnp.float32)
    for i in range(n_hidden):
        d = gammas[i].shape[0]
        gb = gb.at[i, 0, :d].set(gammas[i].astype(jnp.float32))
        gb = gb.at[i, 1, :d].set(betas[i].astype(jnp.float32))

    b_out_p = jnp.zeros((1, dout_p), jnp.float32).at[0, :noutput].set(b_out.astype(jnp.float32))

    all_inputs = [x_p] + w_ps + [gb, b_out_p]
    in_specs = [pl.BlockSpec(memory_space=pltpu.MemorySpace.VMEM) for _ in all_inputs]
    out_spec = pl.BlockSpec(memory_space=pltpu.MemorySpace.VMEM)

    kernel = functools.partial(_mlp_g_kernel, n_hidden, eps)
    out_p = pl.pallas_call(
        kernel,
        out_shape=jax.ShapeDtypeStruct((batch, dout_p), jnp.float32),
        in_specs=in_specs,
        out_specs=out_spec,
    )(*all_inputs)
    return out_p[:, :noutput]


def mlp_g_reference(x, weights, gammas, betas, b_out, eps=1e-5):
    """Pure-JAX f32 reference (true module semantics, un-padded, f32 weights)."""
    h = x.astype(jnp.float32)
    n_hidden = len(gammas)
    for i in range(n_hidden):
        h = h @ weights[i]                      # hidden bias is zero at init (and BN cancels it)
        mean = jnp.mean(h, axis=0, keepdims=True)
        var = jnp.mean((h - mean) ** 2, axis=0, keepdims=True)
        h = (h - mean) / jnp.sqrt(var + eps)
        h = h * gammas[i][None, :] + betas[i][None, :]
        h = jnp.maximum(h, 0.0)
    return h @ weights[-1] + b_out[None, :]


if __name__ == "__main__":
    # Small shapes consistent with the module's forward:
    #   x: (batch, ninput), hidden layers "64-64", output noutput.
    batch, ninput, noutput = 8, 32, 32
    layers_str = "64-64"

    key = jax.random.PRNGKey(0)
    key, k_x, k_p = jax.random.split(key, 3)
    x = jax.random.normal(k_x, (batch, ninput), jnp.float32)

    weights, gammas, betas, b_out = init_mlp_g_params(k_p, ninput, noutput, layers_str)

    out = mlp_g_forward(x, weights, gammas, betas, b_out)
    out = jax.block_until_ready(out)

    ref = mlp_g_reference(x, weights, gammas, betas, b_out)
    assert out.shape == (batch, noutput)
    # Tolerance loosened for bf16 matmul inputs (f32 accumulation + f32 BN math).
    assert jnp.allclose(out, ref, atol=1e-3, rtol=5e-2), "mismatch vs reference"

    print("KERNEL_OK")
</pallas_src>

<mosaic_0001>
module attributes {stable_mosaic.version = 11 : i64} {
  func.func @_mlp_g_kernel(%arg0: memref<8x128xf32, #tpu.memory_space<vmem>>, %arg1: memref<128x128xbf16, #tpu.memory_space<vmem>>, %arg2: memref<128x128xbf16, #tpu.memory_space<vmem>>, %arg3: memref<128x128xbf16, #tpu.memory_space<vmem>>, %arg4: memref<2x2x128xf32, #tpu.memory_space<vmem>>, %arg5: memref<1x128xf32, #tpu.memory_space<vmem>>, %arg6: memref<8x128xf32, #tpu.memory_space<vmem>>) attributes {dimension_semantics = [], scalar_prefetch = 0 : i64, scratch_operands = 0 : i64, tpu.core_type = #tpu.core_type<tc>} {
    %c0 = arith.constant 0 : index
    %c0_0 = arith.constant 0 : index
    %0 = vector.load %arg0[%c0, %c0_0] : memref<8x128xf32, #tpu.memory_space<vmem>>, vector<8x128xf32>
    %1 = arith.truncf %0 : vector<8x128xf32> to vector<8x128xbf16>
    %c0_1 = arith.constant 0 : index
    %c0_2 = arith.constant 0 : index
    %2 = vector.load %arg1[%c0_1, %c0_2] : memref<128x128xbf16, #tpu.memory_space<vmem>>, vector<128x128xbf16>
    %cst = arith.constant dense<0.000000e+00> : vector<8x128xf32>
    %3 = tpu.matmul %1, %2, %cst {dimension_numbers = #tpu.dot_dimension_numbers<[1], [0], [0], [1], [0, 0, 1, 1], [], []>} : vector<8x128xbf16>, vector<128x128xbf16>, vector<8x128xf32> -> vector<8x128xf32>
    %c0_3 = arith.constant 0 : index
    %c0_4 = arith.constant 0 : index
    %c0_5 = arith.constant 0 : index
    %4 = vector.load %arg4[%c0_3, %c0_4, %c0_5] : memref<2x2x128xf32, #tpu.memory_space<vmem>>, vector<1x2x128xf32>
    %5 = vector.shape_cast %4 : vector<1x2x128xf32> to vector<2x128xf32>
    %cst_6 = arith.constant dense<0.000000e+00> : vector<128xf32>
    %6 = vector.multi_reduction <add>, %3, %cst_6 [0] : vector<8x128xf32> to vector<128xf32>
    %7 = vector.shape_cast %6 : vector<128xf32> to vector<1x128xf32>
    %cst_7 = arith.constant 8.000000e+00 : f32
    %8 = vector.broadcast %cst_7 : f32 to vector<1x128xf32>
    %9 = arith.divf %7, %8 : vector<1x128xf32>
    %10 = vector.broadcast %9 : vector<1x128xf32> to vector<8x128xf32>
    %11 = arith.subf %3, %10 : vector<8x128xf32>
    %12 = arith.mulf %11, %11 : vector<8x128xf32>
    %cst_8 = arith.constant dense<0.000000e+00> : vector<128xf32>
    %13 = vector.multi_reduction <add>, %12, %cst_8 [0] : vector<8x128xf32> to vector<128xf32>
    %14 = vector.shape_cast %13 : vector<128xf32> to vector<1x128xf32>
    %cst_9 = arith.constant 8.000000e+00 : f32
    %15 = vector.broadcast %cst_9 : f32 to vector<1x128xf32>
    %16 = arith.divf %14, %15 : vector<1x128xf32>
    %17 = vector.extract_strided_slice %5 {offsets = [0, 0], sizes = [1, 128], strides = [1, 1]} : vector<2x128xf32> to vector<1x128xf32>
    %cst_10 = arith.constant 9.99999974E-6 : f32
    %18 = vector.broadcast %cst_10 : f32 to vector<1x128xf32>
    %19 = arith.addf %16, %18 : vector<1x128xf32>
    %20 = math.rsqrt %19 : vector<1x128xf32>
    %21 = arith.mulf %17, %20 : vector<1x128xf32>
    %22 = vector.broadcast %21 : vector<1x128xf32> to vector<8x128xf32>
    %23 = arith.mulf %11, %22 : vector<8x128xf32>
    %24 = vector.extract_strided_slice %5 {offsets = [1, 0], sizes = [1, 128], strides = [1, 1]} : vector<2x128xf32> to vector<1x128xf32>
    %25 = vector.broadcast %24 : vector<1x128xf32> to vector<8x128xf32>
    %26 = arith.addf %23, %25 : vector<8x128xf32>
    %cst_11 = arith.constant 0.000000e+00 : f32
    %27 = vector.broadcast %cst_11 : f32 to vector<8x128xf32>
    %28 = arith.maximumf %26, %27 : vector<8x128xf32>
    %29 = arith.truncf %28 : vector<8x128xf32> to vector<8x128xbf16>
    %c0_12 = arith.constant 0 : index
    %c0_13 = arith.constant 0 : index
    %30 = vector.load %arg2[%c0_12, %c0_13] : memref<128x128xbf16, #tpu.memory_space<vmem>>, vector<128x128xbf16>
    %cst_14 = arith.constant dense<0.000000e+00> : vector<8x128xf32>
    %31 = tpu.matmul %29, %30, %cst_14 {dimension_numbers = #tpu.dot_dimension_numbers<[1], [0], [0], [1], [0, 0, 1, 1], [], []>} : vector<8x128xbf16>, vector<128x128xbf16>, vector<8x128xf32> -> vector<8x128xf32>
    %c1 = arith.constant 1 : index
    %c0_15 = arith.constant 0 : index
    %c0_16 = arith.constant 0 : index
    %32 = vector.load %arg4[%c1, %c0_15, %c0_16] : memref<2x2x128xf32, #tpu.memory_space<vmem>>, vector<1x2x128xf32>
    %33 = vector.shape_cast %32 : vector<1x2x128xf32> to vector<2x128xf32>
    %cst_17 = arith.constant dense<0.000000e+00> : vector<128xf32>
    %34 = vector.multi_reduction <add>, %31, %cst_17 [0] : vector<8x128xf32> to vector<128xf32>
    %35 = vector.shape_cast %34 : vector<128xf32> to vector<1x128xf32>
    %cst_18 = arith.constant 8.000000e+00 : f32
    %36 = vector.broadcast %cst_18 : f32 to vector<1x128xf32>
    %37 = arith.divf %35, %36 : vector<1x128xf32>
    %38 = vector.broadcast %37 : vector<1x128xf32> to vector<8x128xf32>
    %39 = arith.subf %31, %38 : vector<8x128xf32>
    %40 = arith.mulf %39, %39 : vector<8x128xf32>
    %cst_19 = arith.constant dense<0.000000e+00> : vector<128xf32>
    %41 = vector.multi_reduction <add>, %40, %cst_19 [0] : vector<8x128xf32> to vector<128xf32>
    %42 = vector.shape_cast %41 : vector<128xf32> to vector<1x128xf32>
    %cst_20 = arith.constant 8.000000e+00 : f32
    %43 = vector.broadcast %cst_20 : f32 to vector<1x128xf32>
    %44 = arith.divf %42, %43 : vector<1x128xf32>
    %45 = vector.extract_strided_slice %33 {offsets = [0, 0], sizes = [1, 128], strides = [1, 1]} : vector<2x128xf32> to vector<1x128xf32>
    %cst_21 = arith.constant 9.99999974E-6 : f32
    %46 = vector.broadcast %cst_21 : f32 to vector<1x128xf32>
    %47 = arith.addf %44, %46 : vector<1x128xf32>
    %48 = math.rsqrt %47 : vector<1x128xf32>
    %49 = arith.mulf %45, %48 : vector<1x128xf32>
    %50 = vector.broadcast %49 : vector<1x128xf32> to vector<8x128xf32>
    %51 = arith.mulf %39, %50 : vector<8x128xf32>
    %52 = vector.extract_strided_slice %33 {offsets = [1, 0], sizes = [1, 128], strides = [1, 1]} : vector<2x128xf32> to vector<1x128xf32>
    %53 = vector.broadcast %52 : vector<1x128xf32> to vector<8x128xf32>
    %54 = arith.addf %51, %53 : vector<8x128xf32>
    %cst_22 = arith.constant 0.000000e+00 : f32
    %55 = vector.broadcast %cst_22 : f32 to vector<8x128xf32>
    %56 = arith.maximumf %54, %55 : vector<8x128xf32>
    %57 = arith.truncf %56 : vector<8x128xf32> to vector<8x128xbf16>
    %c0_23 = arith.constant 0 : index
    %c0_24 = arith.constant 0 : index
    %58 = vector.load %arg3[%c0_23, %c0_24] : memref<128x128xbf16, #tpu.memory_space<vmem>>, vector<128x128xbf16>
    %cst_25 = arith.constant dense<0.000000e+00> : vector<8x128xf32>
    %59 = tpu.matmul %57, %58, %cst_25 {dimension_numbers = #tpu.dot_dimension_numbers<[1], [0], [0], [1], [0, 0, 1, 1], [], []>} : vector<8x128xbf16>, vector<128x128xbf16>, vector<8x128xf32> -> vector<8x128xf32>
    %c0_26 = arith.constant 0 : index
    %c0_27 = arith.constant 0 : index
    %60 = vector.load %arg5[%c0_26, %c0_27] : memref<1x128xf32, #tpu.memory_space<vmem>>, vector<1x128xf32>
    %61 = vector.broadcast %60 : vector<1x128xf32> to vector<8x128xf32>
    %62 = arith.addf %59, %61 : vector<8x128xf32>
    %c0_28 = arith.constant 0 : index
    %c0_29 = arith.constant 0 : index
    %63 = vector.load %arg6[%c0_28, %c0_29] : memref<8x128xf32, #tpu.memory_space<vmem>>, vector<8x128xf32>
    tpu.vector_store %arg6[%c0_28, %c0_29], %62 {strides = array<i32>} : memref<8x128xf32, #tpu.memory_space<vmem>>, vector<8x128xf32>,
    return
  }
}

</mosaic_0001>

<bundles_post_ra>
// kernel: tpu_custom_call.1
= control target key start
LH: loop header
LB: loop body
LE: loop exit
PB: predicated region body
PF: predicated region fallthrough
CT: control target
= control target key end

     0   :  { %11 = vsyncpa [#allocation3], 0  ;;  %s852_s0 = inlined_call_operand.hbm [shape: f32[8,128], index: 0, kind: input, shape index: {}]   ;;  %s853_s1 = inlined_call_operand.hbm [shape: bf16[128,128], index: 1, kind: input, shape index: {}]   ;;  %s854_s2 = inlined_call_operand.hbm [shape: bf16[128,128], index: 2, kind: input, shape index: {}]   ;;  %s855_s3 = inlined_call_operand.hbm [shape: bf16[128,128], index: 3, kind: input, shape index: {}]   ;;  %s856_s4 = inlined_call_operand.vmem [shape: f32[2,2,128], index: 4, kind: input, shape index: {}]   ;;  %s857_s5 = inlined_call_operand.vmem [shape: f32[1,128], index: 5, kind: input, shape index: {}]   ;;  %s858_s6 = inlined_call_operand.hbm [shape: f32[8,128], index: 6, kind: output, shape index: {}]  }
   0x1   :  { %12 = vsyncpa [#allocation6], 0 }
   0x2   :  { %13 = vsyncpa [#allocation9], 0 }
   0x3   :  { %14 = vsyncpa [#allocation4], 0  ;;  %s741_s21 = smov [#allocation5]  }
   0x4   :  { %s30_s22 = sshll.u32 %s741_s21, 4  ;;  %s31_s22 = int_to_ptr.vmem [resolvable:$true] %s30_s22 }
   0x5   :  { %s641_s23 = scalar_lea.vmem %s31_s22, 1024  ;;  %p646_p1 = scmp.lt.s32.totalorder %s31_s22, %s31_s22 }
   0x6   :  { %p642_p0 = scmp.ne.s32.totalorder %s31_s22, %s641_s23  ;;  %p647_p2 = scmp.lt.s32.totalorder %s641_s23, %s641_s23 }
   0x8   :  { %p648_p3 = por %p647_p2, %p646_p1 }
   0xa   :  { %p649_p4 = pnand %p648_p3, %p642_p0 }
   0xc   :  { %652 = shalt.err (!%p649_p4)
}
   0xd   :  { %s742_s24 = smov 64   ;;  %s743_s25 = smov 4  }
   0xe   :  { %36 = dma.hbm_to_vmem [thread:$0]  %s853_s1, 1024, %s31_s22, [#allocation6], %s742_s24, %s742_s24, %s743_s25  }
   0xf   :  { %s744_s28 = smov [#allocation2]   ;;  %s745_s30 = smov [#allocation7]  }
  0x10   :  { %s21_s29 = sshll.u32 %s744_s28, 4  ;;  %s42_s7 = sshll.u32 %s745_s30, 4  ;;  %s22_s29 = int_to_ptr.vmem [resolvable:$true] %s21_s29  ;;  %s43_s7 = int_to_ptr.vmem [resolvable:$true] %s42_s7 }
  0x11   :  { %s661_s8 = scalar_lea.vmem %s22_s29, 128  ;;  %p666_p6 = scmp.lt.s32.totalorder %s22_s29, %s22_s29 }
  0x12   :  { %p662_p5 = scmp.ne.s32.totalorder %s22_s29, %s661_s8  ;;  %p667_p7 = scmp.lt.s32.totalorder %s661_s8, %s661_s8 }
  0x14   :  { %p668_p8 = por %p667_p7, %p666_p6 }
  0x16   :  { %p669_p9 = pnand %p668_p8, %p662_p5 }
  0x18   :  { %672 = shalt.err (!%p669_p9)
}
  0x19   :  { %24 = dma.hbm_to_vmem [thread:$0]  %s852_s0, 128, %s22_s29, [#allocation3]  }
  0x1a   :  { %s681_s11 = scalar_lea.vmem %s43_s7, 1024  ;;  %p686_p11 = scmp.lt.s32.totalorder %s43_s7, %s43_s7 }
  0x1b   :  { %p682_p10 = scmp.ne.s32.totalorder %s43_s7, %s681_s11  ;;  %p687_p12 = scmp.lt.s32.totalorder %s681_s11, %s681_s11 }
  0x1d   :  { %p688_p13 = por %p687_p12, %p686_p11 }
  0x1f   :  { %p689_p0 = pnand %p688_p13, %p682_p10 }
  0x21   :  { %692 = shalt.err (!%p689_p0)
}
  0x22   :  { %48 = dma.hbm_to_vmem [thread:$0]  %s854_s2, 1024, %s43_s7, [#allocation6], %s742_s24, %s742_s24, %s743_s25  }
  0x23   :  { %s746_s13 = smov [#allocation8]  }
  0x24   :  { %s54_s14 = sshll.u32 %s746_s13, 4  ;;  %s55_s14 = int_to_ptr.vmem [resolvable:$true] %s54_s14 }
  0x25   :  { %s701_s15 = scalar_lea.vmem %s55_s14, 1024  ;;  %p706_p2 = scmp.lt.s32.totalorder %s55_s14, %s55_s14 }
  0x26   :  { %p702_p1 = scmp.ne.s32.totalorder %s55_s14, %s701_s15  ;;  %p707_p3 = scmp.lt.s32.totalorder %s701_s15, %s701_s15 }
  0x28   :  { %p708_p4 = por %p707_p3, %p706_p2 }
  0x2a   :  { %p709_p5 = pnand %p708_p4, %p702_p1 }
  0x2c   :  { %712 = shalt.err (!%p709_p5)
}
  0x2d   :  { %60 = dma.hbm_to_vmem [thread:$0]  %s855_s3, 1024, %s55_s14, [#allocation9], %s742_s24, %s742_s24, %s743_s25  }
  0x2e   :  { %733 = dma.done.wait [#allocation3], 128  }
  0x2f   :  { %734 = vsyncadd [#allocation3], 4294967168 }
  0x30   :  { %735 = dma.done.wait [#allocation6], 2048  }
  0x31   :  { %736 = vsyncadd [#allocation6], 4294965248 }
  0x32   :  { %737 = dma.done.wait [#allocation9], 1024  }
  0x33   :  { %738 = vsyncadd [#allocation9], 4294966272  ;;  %v747_v0 = vmov 0.0   ;;  %vm748_vm0 = vmmov 0   ;;  %v605_v1 = vld [vmem:[#allocation5 + $0x38] sm:$0xff]   ;;  %v606_v2 = vld [vmem:[#allocation5 + $0x30] sm:$0xff]   ;;  %v205_v40 = vlaneseq }
  0x34   :  { %536 = vmatprep.subr.bf16.mxu0 %v747_v0  ;;  %552 = vmatprep.mubr.msk.bf16.mxu0 %vm748_vm0, %v747_v0  ;;  %v607_v3 = vld [vmem:[#allocation5 + $0x28] sm:$0xff]   ;;  %v608_v4 = vld [vmem:[#allocation5 + $0x20] sm:$0xff]   ;;  %v609_v5 = vld [vmem:[#allocation5 + $0x18] sm:$0xff]   ;;  %s749_s21 = smov [#allocation10]  }
  0x35   :  { %556 = vmatprep.subr.bf16.mxu1 %v747_v0  ;;  %572 = vmatprep.mubr.msk.bf16.mxu1 %vm748_vm0, %v747_v0  ;;  %v610_v6 = vld [vmem:[#allocation5 + $0x10] sm:$0xff]   ;;  %v611_v7 = vld [vmem:[#allocation5 + $0x8] sm:$0xff]   ;;  %v612_v8 = vld [vmem:[#allocation5] sm:$0xff]   ;;  %v829_v41 = vshrl.u32 %v205_v40, 7  ;;  %s472_s22 = sshll.u32 %s749_s21, 4  ;;  %s473_s22 = int_to_ptr.vmem [resolvable:$true] %s472_s22 }
  0x36   :  { %537 = vmatpush3.bf16.msra.mxu0 %v605_v1  ;;  %v78_v9 = vld [vmem:[#allocation2] sm:$0xff]  ;;  %v614_v12 = vld [vmem:[#allocation7 + $0x30] sm:$0xff]   ;;  %v615_v13 = vld [vmem:[#allocation7 + $0x28] sm:$0xff]   ;;  %p718_p7 = scmp.lt.s32.totalorder %s473_s22, %s473_s22 }
  0x37   :  { %538 = vmatprep.subr.bf16.mxu0 %v747_v0  ;;  %v79_v10 = vpack.c.bf16 %v78_v9, %v78_v9  ;;  %v613_v11 = vld [vmem:[#allocation7 + $0x38] sm:$0xff]   ;;  %v616_v14 = vld [vmem:[#allocation7 + $0x20] sm:$0xff]   ;;  %v618_v16 = vld [vmem:[#allocation7 + $0x10] sm:$0xff]   ;;  %v207_v43 = vsub.s32 0, %v829_v41  ;;  %v212_v44 = vsub.s32 1, %v829_v41 }
  0x38   :  { %557 = vmatpush3.bf16.msra.mxu1 %v613_v11  ;;  %v617_v15 = vld [vmem:[#allocation7 + $0x18] sm:$0xff]   ;;  %v619_v17 = vld [vmem:[#allocation7 + $0x8] sm:$0xff]   ;;  %v620_v18 = vld [vmem:[#allocation7] sm:$0xff]  }
  0x39   :  { %558 = vmatprep.subr.bf16.mxu1 %v747_v0  ;;  %v184_v42 = vld [vmem:[%s856_s4] sm:$0x3]  ;;  %v622_v54 = vld [vmem:[#allocation8 + $0x30] sm:$0xff]   ;;  %v623_v55 = vld [vmem:[#allocation8 + $0x28] sm:$0xff]  }
  0x3a   :  { %539 = vmatpush3.bf16.msra.mxu0 %v606_v2  ;;  %v213_v48 = vrot.slane %v184_v42, %v212_v44  ;;  %v621_v53 = vld [vmem:[#allocation8 + $0x38] sm:$0xff]   ;;  %v624_v56 = vld [vmem:[#allocation8 + $0x20] sm:$0xff]   ;;  %v626_v58 = vld [vmem:[#allocation8 + $0x10] sm:$0xff]  }
  0x3b   :  { %540 = vmatprep.subr.bf16.mxu0 %v747_v0  ;;  %v625_v57 = vld [vmem:[#allocation8 + $0x18] sm:$0xff]   ;;  %v627_v59 = vld [vmem:[#allocation8 + $0x8] sm:$0xff]   ;;  %v628_v60 = vld [vmem:[#allocation8] sm:$0xff]  }
  0x3c   :  { %559 = vmatpush3.bf16.msra.mxu1 %v614_v12 }
  0x3d   :  { %560 = vmatprep.subr.bf16.mxu1 %v747_v0 }
  0x3e   :  { %541 = vmatpush3.bf16.msra.mxu0 %v607_v3 }
  0x3f   :  { %542 = vmatprep.subr.bf16.mxu0 %v747_v0 }
  0x40   :  { %561 = vmatpush3.bf16.msra.mxu1 %v615_v13 }
  0x41   :  { %562 = vmatprep.subr.bf16.mxu1 %v747_v0 }
  0x42   :  { %543 = vmatpush3.bf16.msra.mxu0 %v608_v4 }
  0x43   :  { %544 = vmatprep.subr.bf16.mxu0 %v747_v0 }
  0x44   :  { %563 = vmatpush3.bf16.msra.mxu1 %v616_v14 }
  0x45   :  { %564 = vmatprep.subr.bf16.mxu1 %v747_v0 }
  0x46   :  { %545 = vmatpush3.bf16.msra.mxu0 %v609_v5 }
  0x47   :  { %546 = vmatprep.subr.bf16.mxu0 %v747_v0 }
  0x48   :  { %565 = vmatpush3.bf16.msra.mxu1 %v617_v15 }
  0x49   :  { %566 = vmatprep.subr.bf16.mxu1 %v747_v0 }
  0x4a   :  { %547 = vmatpush3.bf16.msra.mxu0 %v610_v6 }
  0x4b   :  { %548 = vmatprep.subr.bf16.mxu0 %v747_v0 }
  0x4c   :  { %567 = vmatpush3.bf16.msra.mxu1 %v618_v16 }
  0x4d   :  { %568 = vmatprep.subr.bf16.mxu1 %v747_v0 }
  0x4e   :  { %549 = vmatpush3.bf16.msra.mxu0 %v611_v7 }
  0x4f   :  { %550 = vmatprep.subr.bf16.mxu0 %v747_v0 }
  0x50   :  { %569 = vmatpush3.bf16.msra.mxu1 %v619_v17 }
  0x51   :  { %570 = vmatprep.subr.bf16.mxu1 %v747_v0 }
  0x52   :  { %551 = vmatpush3.bf16.msra.mxu0 %v612_v8 }
  0x53   :  { %576 = vmatprep.subr.bf16.mxu0 %v747_v0 }
  0x54   :  { %571 = vmatpush3.bf16.msra.mxu1 %v620_v18  ;;  %v499_v18 = vld [vmem:[%s856_s4 + $0x2] sm:$0x3]  ;;  %s713_s4 = scalar_lea.vmem %s473_s22, 128 }
  0x55   :  { %553 = vmatmul.mubr.bf16.vlgmr.msra.gmra.mxu0 %v79_v10  ;;  %p714_p6 = scmp.ne.s32.totalorder %s473_s22, %s713_s4  ;;  %p719_p8 = scmp.lt.s32.totalorder %s713_s4, %s713_s4 }
  0x56   :  { %592 = vmatprep.mubr.msk.bf16.mxu0 %vm748_vm0, %v747_v0  ;;  %577 = vmatpush3.bf16.msra.mxu0 %v621_v53 }
  0x57   :  { %578 = vmatprep.subr.bf16.mxu0 %v747_v0  ;;  %p720_p9 = por %p719_p8, %p718_p7 }
  0x59   :  { %p721_p10 = pnand %p720_p9, %p714_p6 }
  0x5a   :  { %579 = vmatpush3.bf16.msra.mxu0 %v622_v54 }
  0x5b   :  { %580 = vmatprep.subr.bf16.mxu0 %v747_v0 }
  0x5e   :  { %581 = vmatpush3.bf16.msra.mxu0 %v623_v55 }
  0x5f   :  { %582 = vmatprep.subr.bf16.mxu0 %v747_v0 }
  0x62   :  { %583 = vmatpush3.bf16.msra.mxu0 %v624_v56 }
  0x63   :  { %584 = vmatprep.subr.bf16.mxu0 %v747_v0 }
  0x66   :  { %585 = vmatpush3.bf16.msra.mxu0 %v625_v57 }
  0x67   :  { %586 = vmatprep.subr.bf16.mxu0 %v747_v0 }
  0x6a   :  { %587 = vmatpush3.bf16.msra.mxu0 %v626_v58 }
  0x6b   :  { %588 = vmatprep.subr.bf16.mxu0 %v747_v0 }
  0x6e   :  { %589 = vmatpush3.bf16.msra.mxu0 %v627_v59 }
  0x6f   :  { %590 = vmatprep.subr.bf16.mxu0 %v747_v0 }
  0x72   :  { %591 = vmatpush3.bf16.msra.mxu0 %v628_v60 }
 0x115   :  { %v178_v19 = vpop.f32.mrf.mxu0 }
 0x116   :  { %v185_v20 = vrot.slane %v178_v19, 4 }
 0x117   :  { %v554_v21 = vpop.f32.mrf.mxu0 }
 0x118   :  { %v186_v22 = vadd.f32 %v185_v20, %v178_v19 }
 0x119   :  { %v181_v23 = vpop.f32.mrf.mxu0 }
 0x11a   :  { %v187_v24 = vrot.slane %v186_v22, 2 }
 0x11b   :  { %v555_v25 = vpop.f32.mrf.mxu0 }
 0x11c   :  { %v188_v26 = vadd.f32 %v187_v24, %v186_v22  ;;  %v350_v22 = vrot.slane %v499_v18, %v212_v44 }
 0x11e   :  { %v189_v27 = vrot.slane %v188_v26, 1 }
 0x120   :  { %v190_v28 = vadd.f32 %v189_v27, %v188_v26  ;;  %v500_v27 = vld [vmem:[%s857_s5] ss:$0 sm:$0xff] }
 0x122   :  { %v192_v29 = vmul.f32 0.125, %v190_v28 }
 0x124   :  { %v193_v30 = vsub.f32 %v178_v19, %v192_v29 }
 0x126   :  { %v194_v31 = vmul.f32 %v193_v30, %v193_v30 }
 0x128   :  { %v195_v32 = vrot.slane %v194_v31, 4 }
 0x12a   :  { %v196_v33 = vadd.f32 %v195_v32, %v194_v31 }
 0x12c   :  { %v197_v34 = vrot.slane %v196_v33, 2 }
 0x12e   :  { %v198_v35 = vadd.f32 %v197_v34, %v196_v33 }
 0x130   :  { %v199_v36 = vrot.slane %v198_v35, 1 }
 0x132   :  { %v200_v37 = vadd.f32 %v199_v36, %v198_v35 }
 0x134   :  { %v201_v38 = vmul.f32 0.125, %v200_v37 }
 0x136   :  { %v202_v39 = vadd.f32 1e-05, %v201_v38 }
 0x138   :  { %629 = vrsqrt.f32 %v202_v39 }
 0x145   :  { %v630_v45 = vpop.eup %629 }
 0x146   :  { %v204_v46 = vmul.f32 %v630_v45, %v184_v42 }
 0x148   :  { %v208_v47 = vrot.slane %v204_v46, %v207_v43 }
 0x14a   :  { %v209_v49 = vmul.f32 %v208_v47, %v193_v30 }
 0x14c   :  { %v214_v50 = vadd.f32 %v213_v48, %v209_v49 }
 0x14e   :  { %v215_v51 = vmax.f32 %v214_v50, 0.0 }
 0x150   :  { %v216_v52 = vpack.c.bf16 %v215_v51, %v215_v51 }
 0x152   :  { %573 = vmatmul.mubr.bf16.vlgmr.msra.gmra.mxu1 %v216_v52 }
 0x212   :  { %v315_v61 = vpop.f32.mrf.mxu1 }
 0x213   :  { %v323_v62 = vrot.slane %v315_v61, 4 }
 0x214   :  { %v574_v63 = vpop.f32.mrf.mxu1 }
 0x215   :  { %v324_v1 = vadd.f32 %v323_v62, %v315_v61 }
 0x216   :  { %v318_v2 = vpop.f32.mrf.mxu1 }
 0x217   :  { %v325_v3 = vrot.slane %v324_v1, 2 }
 0x218   :  { %v575_v4 = vpop.f32.mrf.mxu1 }
 0x219   :  { %v326_v5 = vadd.f32 %v325_v3, %v324_v1 }
 0x21b   :  { %v327_v6 = vrot.slane %v326_v5, 1 }
 0x21d   :  { %v328_v7 = vadd.f32 %v327_v6, %v326_v5 }
 0x21f   :  { %v329_v8 = vmul.f32 0.125, %v328_v7 }
 0x221   :  { %v330_v9 = vsub.f32 %v315_v61, %v329_v8 }
 0x223   :  { %v331_v10 = vmul.f32 %v330_v9, %v330_v9 }
 0x225   :  { %v332_v11 = vrot.slane %v331_v10, 4 }
 0x227   :  { %v333_v12 = vadd.f32 %v332_v11, %v331_v10 }
 0x229   :  { %v334_v13 = vrot.slane %v333_v12, 2 }
 0x22b   :  { %v335_v14 = vadd.f32 %v334_v13, %v333_v12 }
 0x22d   :  { %v336_v0 = vrot.slane %v335_v14, 1 }
 0x22f   :  { %v337_v15 = vadd.f32 %v336_v0, %v335_v14 }
 0x231   :  { %v338_v16 = vmul.f32 0.125, %v337_v15 }
 0x233   :  { %v339_v17 = vadd.f32 1e-05, %v338_v16 }
 0x235   :  { %631 = vrsqrt.f32 %v339_v17 }
 0x242   :  { %v632_v19 = vpop.eup %631 }
 0x243   :  { %v341_v20 = vmul.f32 %v632_v19, %v499_v18 }
 0x245   :  { %v345_v21 = vrot.slane %v341_v20, %v207_v43 }
 0x247   :  { %v346_v23 = vmul.f32 %v345_v21, %v330_v9 }
 0x249   :  { %v351_v24 = vadd.f32 %v350_v22, %v346_v23 }
 0x24b   :  { %v352_v25 = vmax.f32 %v351_v24, 0.0 }
 0x24d   :  { %v353_v26 = vpack.c.bf16 %v352_v25, %v352_v25 }
 0x24f   :  { %593 = vmatmul.mubr.bf16.vlgmr.msra.gmra.mxu0 %v353_v26 }
 0x30f   :  { %v459_v28 = vpop.f32.mrf.mxu0 }
 0x310   :  { %v460_v29 = vadd.f32 %v500_v27, %v459_v28 }
 0x311   :  { %v594_v30 = vpop.f32.mrf.mxu0 }
 0x312   :  { %465 = vst [vmem:[#allocation10] sm:$0xff] %v460_v29 }
 0x313   :  { %v462_v31 = vpop.f32.mrf.mxu0 }
 0x314   :  { %724 = shalt.err (!%p721_p10)
}
 0x315   :  { %475 = dma.vmem_to_hbm [thread:$0]  %s473_s22, 128, %s858_s6, [#allocation4]   ;;  %v595_v32 = vpop.f32.mrf.mxu0 }
 0x316   :  { %739 = dma.done.wait [#allocation4], 128  }
 0x317   :  { %740 = vsyncadd [#allocation4], 4294967168 }
 0x318   :  { %479 = vsyncpa [#allocation3], 1 }
 0x319   :  { %480 = vsyncpa [#allocation6], 1 }
 0x31a   :  { %481 = vsyncpa [#allocation9], 1 }
 0x31b   :  { %482 = vsyncpa [#allocation4], 1 }

</bundles_post_ra>
